<compile_context>
chip_gen: v5e
topology: v5e:2x2
jax: 0.10.0
libtpu: 0.0.40
codegen_flags: <defaults>
</compile_context>

<pallas_src>
import functools

import jax
import jax.numpy as jnp
from jax.experimental import pallas as pl
from jax.experimental.pallas import tpu as pltpu


_PAD_ID = 3  # level == 'word'  ->  padding label id 3 is masked out


def _label_smooth_kernel(x_ref, t_ref, loss_ref, *, smoothing, n_valid, tile_n):
    p = pl.program_id(0)
    j = pl.program_id(1)
    S = pl.num_programs(1)

    @pl.when(j == 0)
    def _():
        loss_ref[...] = jnp.zeros_like(loss_ref)

    x_in = x_ref[...]                       # (TN, C) input dtype
    t = t_ref[...]                          # (TN, 1) int32

    # Row max in the input dtype (exact for bf16/f32); upcast to f32 once.
    m = jnp.max(x_in, axis=-1, keepdims=True).astype(jnp.float32)
    x = x_in.astype(jnp.float32)

    lse = jnp.log(jnp.sum(jnp.exp(x - m), axis=-1, keepdims=True)) + m      # (TN,1)

    C = x.shape[-1]
    uniform = jnp.float32(smoothing / (C - 1.0))
    on_value = jnp.float32(1.0 - smoothing)

    # Fused weighted reduction: since sum(w)==1, loss = lse - sum(w*x).
    col = jax.lax.broadcasted_iota(jnp.int32, x.shape, 1)
    w = jnp.where(col == t, on_value, uniform)                              # (TN,C)
    wsum = jnp.sum(w * x, axis=-1, keepdims=True)                           # (TN,1)
    loss = lse - wsum                                                       # (TN,1)

    # Validity: logits are NOT padded on the host, so gate on the global row index
    # (undefined tail rows may contain Inf/NaN) and on the non-pad label.
    row = (p * S + j) * tile_n + jax.lax.broadcasted_iota(jnp.int32, (tile_n, 1), 0)
    valid = jnp.logical_and(row < n_valid, t != _PAD_ID)

    # jnp.where (NOT multiply) so garbage rows contribute exactly 0.
    partial = jnp.sum(jnp.where(valid, loss, 0.0), axis=0, keepdims=True)   # (1,1)
    loss_ref[...] += partial


def _vmem_capacity_bytes():
    try:
        cap = int(pltpu.get_tpu_info().vmem_capacity_bytes)
        if cap > 0:
            return cap
    except Exception:
        pass
    return 64 * 1024 * 1024  # conservative fallback: v7x per-TC VMEM


def _default_num_parallel():
    # 2 TensorCores per chip only on v7x; v5e/v6e have a single TC.
    try:
        kind = jax.devices()[0].device_kind.lower()
        if "v7" in kind:
            return 2
    except Exception:
        pass
    return 1


def label_smooth_loss(logits, targets, smoothing=0.0, *, tile_n=None, num_parallel=None):
    """logits: (N, C) float (f32 or bf16); targets: (N,) int. Returns scalar f32 loss."""
    N, C = logits.shape
    itemsize = jnp.dtype(logits.dtype).itemsize

    # --- generation-aware VMEM sizing -------------------------------------------------
    capacity = _vmem_capacity_bytes()                       # 64 MiB (v7x) / 128 MiB (v5e/v6e)
    vmem_limit = int(min(capacity * 3 // 4, 100 * 1024 * 1024))
    budget = max(8 * 1024 * 1024, vmem_limit - 8 * 1024 * 1024)

    if num_parallel is None:
        num_parallel = _default_num_parallel()

    if tile_n is None:
        # Per-row working-set model:
        #   2*C*itemsize : double-buffered logits block (input dtype)
        #   6*C*4        : conservative bound on concurrent f32/i32 (TN,C) temporaries
        #   2*128*4      : double-buffered (TN,1) int32 targets block, lane-padded to 128
        per_row = 2 * C * itemsize + 6 * C * 4 + 2 * 128 * 4
        tile_n = budget // per_row
        tile_n = int(max(8, min(tile_n, 16384)))
    tile_n = max(8, (int(tile_n) // 8) * 8)
    tile_n = min(tile_n, max(8, ((N + 7) // 8) * 8))        # don't overshoot small N
    assert tile_n % 8 == 0, "tile_n must be a multiple of 8 (sublane constraint)"

    n_blocks = -(-N // tile_n)
    P = int(max(1, min(num_parallel, n_blocks)))            # outer "parallel" axis
    S = int(-(-n_blocks // P))                              # inner "arbitrary" accumulation axis
    last_blk = n_blocks - 1

    # No padding / copying of the logits. Targets are just reshaped (metadata only).
    t2d = targets.astype(jnp.int32).reshape(N, 1)

    kernel = functools.partial(
        _label_smooth_kernel,
        smoothing=float(smoothing),
        n_valid=int(N),
        tile_n=int(tile_n),
    )

    # Clamp the block index so blocks past the real data (when P*S > n_blocks) simply
    # re-read the last block; their rows are masked out by the row-validity predicate.
    def x_map(p, j):
        return (jnp.minimum(p * S + j, last_blk), 0)

    def t_map(p, j):
        return (jnp.minimum(p * S + j, last_blk), 0)

    cost = pl.CostEstimate(
        flops=int(6 * N * C),
        transcendentals=int(N * C),
        bytes_accessed=int(N * C * itemsize + N * 4 + 4 * P),
    )

    loss_parts = pl.pallas_call(
        kernel,
        out_shape=jax.ShapeDtypeStruct((P, 1), jnp.float32),
        grid_spec=pltpu.PrefetchScalarGridSpec(
            num_scalar_prefetch=0,
            grid=(P, S),
            in_specs=[
                pl.BlockSpec((tile_n, C), x_map),
                pl.BlockSpec((tile_n, 1), t_map),
            ],
            out_specs=pl.BlockSpec((1, 1), lambda p, j: (p, 0)),
        ),
        compiler_params=pltpu.CompilerParams(
            dimension_semantics=("parallel", "arbitrary"),
            vmem_limit_bytes=int(vmem_limit),
        ),
        cost_estimate=cost,
    )(logits, t2d)

    loss_sum = jnp.sum(loss_parts)
    # Denominator in plain JAX: touches only 4*N bytes, negligible vs. the N*C stream.
    mask_sum = jnp.sum((targets != _PAD_ID).astype(jnp.float32))
    # Matches the PyTorch module: division by zero (NaN) if every target is the pad id.
    return (loss_sum / mask_sum).astype(jnp.float32)


def _reference(logits, targets, smoothing):
    # pure-JAX reference for sanity check
    x = logits.astype(jnp.float32)
    log_prob = jax.nn.log_softmax(x, axis=-1)
    C = x.shape[-1]
    w = jnp.full_like(x, smoothing / (C - 1.0))
    onehot = jax.nn.one_hot(targets, C, dtype=x.dtype)
    w = w * (1.0 - onehot) + onehot * (1.0 - smoothing)
    loss = jnp.sum(-w * log_prob, axis=-1)
    mask = (targets != _PAD_ID).astype(loss.dtype)
    return jnp.sum(loss * mask) / jnp.sum(mask)


if __name__ == "__main__":
    key = jax.random.PRNGKey(0)
    k1, k2 = jax.random.split(key)

    N, C = 200, 128          # small: 200 rows, vocab of 128 classes (exercises partial blocks)
    smoothing = 0.1

    logits = jax.random.normal(k1, (N, C), dtype=jnp.float32)
    targets = jax.random.randint(k2, (N,), 0, C, dtype=jnp.int32)
    targets = targets.at[2].set(_PAD_ID)     # ensure some masked (pad) labels
    targets = targets.at[17].set(_PAD_ID)

    ref = _reference(logits, targets, smoothing)

    # 1) auto tile selection (single partial block, no host-side padding anywhere)
    out = jax.block_until_ready(label_smooth_loss(logits, targets, smoothing))
    assert jnp.allclose(out, ref, rtol=1e-5, atol=1e-5), (out, ref)

    # 2) force multi-step / multi-partition path: partial last block + clamped extra block
    out2 = jax.block_until_ready(
        label_smooth_loss(logits, targets, smoothing, tile_n=32, num_parallel=2))
    assert jnp.allclose(out2, ref, rtol=1e-5, atol=1e-5), (out2, ref)

    # 3) bf16 logits path (halves HBM traffic; max taken in input dtype)
    logits_bf16 = logits.astype(jnp.bfloat16)
    ref_bf16 = _reference(logits_bf16, targets, smoothing)
    out3 = jax.block_until_ready(
        label_smooth_loss(logits_bf16, targets, smoothing, tile_n=64, num_parallel=2))
    assert jnp.allclose(out3, ref_bf16, rtol=1e-4, atol=1e-4), (out3, ref_bf16)

    print("KERNEL_OK")
</pallas_src>

<mosaic_0001>
module attributes {stable_mosaic.version = 11 : i64} {
  func.func @_label_smooth_kernel(%arg0: i32, %arg1: i32, %arg2: memref<200x128xf32, #tpu.memory_space<vmem>>, %arg3: memref<200x1xi32, #tpu.memory_space<vmem>>, %arg4: memref<1x1xf32, #tpu.memory_space<vmem>>) attributes {dimension_semantics = [#tpu.dimension_semantics<parallel>, #tpu.dimension_semantics<arbitrary>], iteration_bounds = array<i64: 1, 1>, scalar_prefetch = 0 : i64, scratch_operands = 0 : i64, tpu.core_type = #tpu.core_type<tc>, window_params = [{transform_indices = @transform_0, window_bounds = array<i64: 200, 128>}, {transform_indices = @transform_1, window_bounds = array<i64: 200, 1>}, {transform_indices = @transform_2, window_bounds = array<i64: 1, 1>}]} {
    %c0_i32 = arith.constant 0 : i32
    %0 = arith.cmpi eq, %arg1, %c0_i32 : i32
    %1 = arith.extui %0 : i1 to i32
    %c0_i32_0 = arith.constant 0 : i32
    %2 = arith.cmpi ne, %1, %c0_i32_0 : i32
    scf.if %2 {
      %cst_15 = arith.constant 0.000000e+00 : f32
      %42 = vector.broadcast %cst_15 : f32 to vector<1x1xf32>
      %c0_16 = arith.constant 0 : index
      %c0_17 = arith.constant 0 : index
      %43 = vector.load %arg4[%c0_16, %c0_17] : memref<1x1xf32, #tpu.memory_space<vmem>>, vector<1x1xf32>
      tpu.vector_store %arg4[%c0_16, %c0_17], %42 {strides = array<i32>} : memref<1x1xf32, #tpu.memory_space<vmem>>, vector<1x1xf32>,
    } else {
    }
    %c0 = arith.constant 0 : index
    %c0_1 = arith.constant 0 : index
    %3 = vector.load %arg2[%c0, %c0_1] : memref<200x128xf32, #tpu.memory_space<vmem>>, vector<200x128xf32>
    %c0_2 = arith.constant 0 : index
    %c0_3 = arith.constant 0 : index
    %4 = vector.load %arg3[%c0_2, %c0_3] : memref<200x1xi32, #tpu.memory_space<vmem>>, vector<200x1xi32>
    %cst = arith.constant dense<0xFF800000> : vector<200xf32>
    %5 = vector.multi_reduction <maximumf>, %3, %cst [1] : vector<200x128xf32> to vector<200xf32>
    %6 = vector.shape_cast %5 : vector<200xf32> to vector<200x1xf32>
    %7 = vector.broadcast %6 : vector<200x1xf32> to vector<200x128xf32>
    %8 = arith.subf %3, %7 : vector<200x128xf32>
    %9 = math.exp %8 : vector<200x128xf32>
    %cst_4 = arith.constant dense<0.000000e+00> : vector<200xf32>
    %10 = vector.multi_reduction <add>, %9, %cst_4 [1] : vector<200x128xf32> to vector<200xf32>
    %11 = vector.shape_cast %10 : vector<200xf32> to vector<200x1xf32>
    %12 = math.log %11 : vector<200x1xf32>
    %13 = arith.addf %12, %6 : vector<200x1xf32>
    %14 = tpu.iota {dimensions = array<i32: 1>} : vector<200x128xi32>
    %15 = vector.broadcast %4 : vector<200x1xi32> to vector<200x128xi32>
    %16 = arith.cmpi eq, %14, %15 : vector<200x128xi32>
    %cst_5 = arith.constant 0.899999976 : f32
    %cst_6 = arith.constant 7.87401571E-4 : f32
    %17 = vector.broadcast %cst_5 : f32 to vector<200x128xf32>
    %18 = vector.broadcast %cst_6 : f32 to vector<200x128xf32>
    %19 = arith.select %16, %17, %18 : vector<200x128xi1>, vector<200x128xf32>
    %20 = arith.mulf %19, %3 : vector<200x128xf32>
    %cst_7 = arith.constant dense<0.000000e+00> : vector<200xf32>
    %21 = vector.multi_reduction <add>, %20, %cst_7 [1] : vector<200x128xf32> to vector<200xf32>
    %22 = vector.shape_cast %21 : vector<200xf32> to vector<200x1xf32>
    %23 = arith.subf %13, %22 : vector<200x1xf32>
    %c1_i32 = arith.constant 1 : i32
    %24 = arith.muli %arg0, %c1_i32 : i32
    %25 = arith.addi %24, %arg1 : i32
    %c200_i32 = arith.constant 200 : i32
    %26 = arith.muli %25, %c200_i32 : i32
    %27 = tpu.iota {dimensions = array<i32: 0>} : vector<200x1xi32>
    %28 = vector.broadcast %26 : i32 to vector<200x1xi32>
    %29 = arith.addi %28, %27 : vector<200x1xi32>
    %c200_i32_8 = arith.constant 200 : i32
    %30 = vector.broadcast %c200_i32_8 : i32 to vector<200x1xi32>
    %31 = arith.cmpi slt, %29, %30 : vector<200x1xi32>
    %c3_i32 = arith.constant 3 : i32
    %32 = vector.broadcast %c3_i32 : i32 to vector<200x1xi32>
    %33 = arith.cmpi ne, %4, %32 : vector<200x1xi32>
    %34 = arith.andi %31, %33 : vector<200x1xi1>
    %cst_9 = arith.constant 0.000000e+00 : f32
    %35 = vector.broadcast %cst_9 : f32 to vector<200x1xf32>
    %36 = arith.select %34, %23, %35 : vector<200x1xi1>, vector<200x1xf32>
    %cst_10 = arith.constant dense<0.000000e+00> : vector<1xf32>
    %37 = vector.multi_reduction <add>, %36, %cst_10 [0] : vector<200x1xf32> to vector<1xf32>
    %38 = vector.shape_cast %37 : vector<1xf32> to vector<1x1xf32>
    %c0_11 = arith.constant 0 : index
    %c0_12 = arith.constant 0 : index
    %39 = vector.load %arg4[%c0_11, %c0_12] : memref<1x1xf32, #tpu.memory_space<vmem>>, vector<1x1xf32>
    %40 = arith.addf %39, %38 : vector<1x1xf32>
    %c0_13 = arith.constant 0 : index
    %c0_14 = arith.constant 0 : index
    %41 = vector.load %arg4[%c0_13, %c0_14] : memref<1x1xf32, #tpu.memory_space<vmem>>, vector<1x1xf32>
    tpu.vector_store %arg4[%c0_13, %c0_14], %40 {strides = array<i32>} : memref<1x1xf32, #tpu.memory_space<vmem>>, vector<1x1xf32>,
    return
  }
  func.func @transform_0(%arg0: i32, %arg1: i32) -> (i32, i32) {
    %c1_i32 = arith.constant 1 : i32
    %0 = arith.muli %arg0, %c1_i32 : i32
    %1 = arith.addi %0, %arg1 : i32
    %c0_i32 = arith.constant 0 : i32
    %2 = arith.minsi %1, %c0_i32 : i32
    %c0_i32_0 = arith.constant 0 : i32
    %c0_i32_1 = arith.constant 0 : i32
    return %2, %c0_i32_0 : i32, i32
  }
  func.func @transform_1(%arg0: i32, %arg1: i32) -> (i32, i32) {
    %c1_i32 = arith.constant 1 : i32
    %0 = arith.muli %arg0, %c1_i32 : i32
    %1 = arith.addi %0, %arg1 : i32
    %c0_i32 = arith.constant 0 : i32
    %2 = arith.minsi %1, %c0_i32 : i32
    %c0_i32_0 = arith.constant 0 : i32
    %c0_i32_1 = arith.constant 0 : i32
    return %2, %c0_i32_0 : i32, i32
  }
  func.func @transform_2(%arg0: i32, %arg1: i32) -> (i32, i32) {
    %c0_i32 = arith.constant 0 : i32
    %c0_i32_0 = arith.constant 0 : i32
    return %arg0, %c0_i32 : i32, i32
  }
}

</mosaic_0001>

<bundles_post_ra>
// kernel: tpu_custom_call.1
= control target key start
LH: loop header
LB: loop body
LE: loop exit
PB: predicated region body
PF: predicated region fallthrough
CT: control target
= control target key end

     0   :  { %s1674_s0 = inlined_call_operand.vmem [shape: f32[200,128], index: 0, kind: input, shape index: {}]   ;;  %s1675_s1 = inlined_call_operand.vmem [shape: s32[200,1], index: 1, kind: input, shape index: {}]   ;;  %s1676_s2 = inlined_call_operand.hbm [shape: f32[1,1], index: 2, kind: output, shape index: {}]  }
   0x1   :  { %v1006_v0 = vld [vmem:[%s1674_s0 + $0x20] sm:$0xff]  ;;  %v1011_v1 = vld [vmem:[%s1674_s0 + $0x10] sm:$0xff] }
   0x2   :  { %v1016_v2 = vld [vmem:[%s1674_s0] sm:$0xff]  ;;  %140 = vmax.xlane.f32.xlu2 %v1006_v0  ;;  %136 = vmax.xlane.f32.xlu1 %v1011_v1 }
   0x3   :  { %132 = vmax.xlane.f32.xlu0 %v1016_v2 }
   0x4   :  { %7 = vsyncpa [#allocation3], 0  ;;  %v1024_v3 = vld [vmem:[%s1674_s0 + $0x28] sm:$0xff]  ;;  %v1029_v4 = vld [vmem:[%s1674_s0 + $0x18] sm:$0xff]  ;;  %vm763_vm8 = vcmask 7168   ;;  %s830_s26 = sshll.u32 %s1676_s2, 4  ;;  %s831_s26 = int_to_ptr.hbm [resolvable:$true] %s830_s26 }
   0x5   :  { %v1034_v5 = vld [vmem:[%s1674_s0 + $0x8] sm:$0xff]  ;;  %v1042_v6 = vld [vmem:[%s1674_s0 + $0x40] sm:$0xff]  ;;  %v1047_v7 = vld [vmem:[%s1674_s0 + $0x38] sm:$0xff] }
   0x6   :  { %v1052_v8 = vld [vmem:[%s1674_s0 + $0x30] sm:$0xff]  ;;  %v1060_v9 = vld [vmem:[%s1674_s0 + $0x58] sm:$0xff]  ;;  %v1070_v11 = vld [vmem:[%s1674_s0 + $0x48] sm:$0xff] }
   0x7   :  { %v1065_v10 = vld [vmem:[%s1674_s0 + $0x50] sm:$0xff]  ;;  %v1083_v13 = vld [vmem:[%s1674_s0 + $0x68] sm:$0xff]  ;;  %v1088_v14 = vld [vmem:[%s1674_s0 + $0x60] sm:$0xff] }
   0x8   :  { %v1078_v12 = vld [vmem:[%s1674_s0 + $0x70] sm:$0xff]  ;;  %v1096_v15 = vld [vmem:[%s1674_s0 + $0x88] sm:$0xff]  ;;  %v1101_v16 = vld [vmem:[%s1674_s0 + $0x80] sm:$0xff] }
   0x9   :  { %v1106_v17 = vld [vmem:[%s1674_s0 + $0x78] sm:$0xff]  ;;  %v1114_v18 = vld [vmem:[%s1674_s0 + $0xa0] sm:$0xff]  ;;  %v1124_v20 = vld [vmem:[%s1674_s0 + $0x90] sm:$0xff] }
   0xa   :  { %142 = vmax.xlane.f32.xlu2 %v1024_v3  ;;  %138 = vmax.xlane.f32.xlu1 %v1029_v4  ;;  %v1119_v19 = vld [vmem:[%s1674_s0 + $0x98] sm:$0xff]  ;;  %v1137_v22 = vld [vmem:[%s1674_s0 + $0xb0] sm:$0xff]  ;;  %v1142_v23 = vld [vmem:[%s1674_s0 + $0xa8] sm:$0xff] }
   0xb   :  { %134 = vmax.xlane.f32.xlu0 %v1034_v5  ;;  %v1132_v21 = vld [vmem:[%s1674_s0 + $0xb8] sm:$0xff]  ;;  %v1150_v24 = vld [vmem:[%s1674_s0 + $0xc0] sm:$0xff] }
  0x12   :  { %148 = vmax.xlane.f32.xlu2 %v1042_v6  ;;  %146 = vmax.xlane.f32.xlu1 %v1047_v7 }
  0x13   :  { %144 = vmax.xlane.f32.xlu0 %v1052_v8 }
  0x1a   :  { %154 = vmax.xlane.f32.xlu2 %v1060_v9  ;;  %152 = vmax.xlane.f32.xlu1 %v1065_v10 }
  0x1b   :  { %150 = vmax.xlane.f32.xlu0 %v1070_v11 }
  0x22   :  { %160 = vmax.xlane.f32.xlu2 %v1078_v12  ;;  %158 = vmax.xlane.f32.xlu1 %v1083_v13 }
  0x23   :  { %156 = vmax.xlane.f32.xlu0 %v1088_v14 }
  0x2a   :  { %166 = vmax.xlane.f32.xlu2 %v1096_v15  ;;  %164 = vmax.xlane.f32.xlu1 %v1101_v16 }
  0x2b   :  { %162 = vmax.xlane.f32.xlu0 %v1106_v17 }
  0x32   :  { %172 = vmax.xlane.f32.xlu2 %v1114_v18  ;;  %170 = vmax.xlane.f32.xlu1 %v1119_v19 }
  0x33   :  { %168 = vmax.xlane.f32.xlu0 %v1124_v20 }
  0x3a   :  { %178 = vmax.xlane.f32.xlu2 %v1132_v21  ;;  %176 = vmax.xlane.f32.xlu1 %v1137_v22 }
  0x3b   :  { %174 = vmax.xlane.f32.xlu0 %v1142_v23 }
  0x43   :  { %180 = vmax.xlane.f32.xlu0 %v1150_v24 }
  0x75   :  { %v1153_v25 = vpop.xlane.xlu2 %140  ;;  %v1155_v26 = vpop.xlane.xlu1 %136 }
  0x76   :  { %1714 = vst [vmem:[#allocation5_spill] sm:$0xff] %v1153_v25  ;;  %v184_v27 = vsub.f32 %v1011_v1, %v1155_v26  ;;  %v1159_v28 = vpop.xlane.xlu0 %132  ;;  %v186_v43 = vsub.f32 %v1006_v0, %v1153_v25 }
  0x77   :  { %v182_v29 = vsub.f32 %v1016_v2, %v1159_v28 }
  0x78   :  { %v211_v30 = vmul.f32 1.442695, %v184_v27  ;;  %v215_v50 = vmul.f32 1.442695, %v186_v43 }
  0x79   :  { %v207_v31 = vmul.f32 1.442695, %v182_v29 }
  0x7a   :  { %858 = vpow2.f32 %v211_v30 }
  0x7b   :  { %860 = vpow2.f32 %v207_v31 }
  0x7d   :  { %v1163_v32 = vpop.xlane.xlu2 %142  ;;  %v1165_v33 = vpop.xlane.xlu1 %138 }
  0x7e   :  { %v187_v34 = vsub.f32 %v1024_v3, %v1163_v32  ;;  %v185_v35 = vsub.f32 %v1029_v4, %v1165_v33  ;;  %v1171_v36 = vpop.xlane.xlu0 %134 }
  0x7f   :  { %v183_v37 = vsub.f32 %v1034_v5, %v1171_v36 }
  0x80   :  { %v217_v38 = vmul.f32 1.442695, %v187_v34  ;;  %v213_v39 = vmul.f32 1.442695, %v185_v35  ;;  %v859_v40 = vpop.eup %858 }
  0x81   :  { %v209_v41 = vmul.f32 1.442695, %v183_v37  ;;  %v861_v42 = vpop.eup %860  ;;  %261 = vadd.xlane.f32.xlu0 %v859_v40 }
  0x82   :  { %862 = vpow2.f32 %v217_v38  ;;  %257 = vadd.xlane.f32.xlu1 %v861_v42 }
  0x83   :  { %864 = vpow2.f32 %v213_v39 }
  0x84   :  { %866 = vpow2.f32 %v209_v41 }
  0x85   :  { %v1177_v44 = vpop.xlane.xlu2 %148  ;;  %v1179_v45 = vpop.xlane.xlu1 %146 }
  0x86   :  { %v190_v46 = vsub.f32 %v1042_v6, %v1177_v44  ;;  %v1183_v47 = vpop.xlane.xlu0 %144  ;;  %v189_v54 = vsub.f32 %v1047_v7, %v1179_v45 }
  0x87   :  { %1715 = vst [vmem:[#allocation6_spill] sm:$0xff] %v1183_v47  ;;  %v188_v48 = vsub.f32 %v1052_v8, %v1183_v47 }
  0x88   :  { %v863_v49 = vpop.eup %862  ;;  %v223_v51 = vmul.f32 1.442695, %v190_v46  ;;  %v221_v57 = vmul.f32 1.442695, %v189_v54 }
  0x89   :  { %v865_v52 = vpop.eup %864  ;;  %v219_v53 = vmul.f32 1.442695, %v188_v48  ;;  %267 = vadd.xlane.f32.xlu0 %v863_v49 }
  0x8a   :  { %v867_v55 = vpop.eup %866  ;;  %868 = vpow2.f32 %v223_v51  ;;  %263 = vadd.xlane.f32.xlu1 %v865_v52 }
  0x8b   :  { %870 = vpow2.f32 %v219_v53  ;;  %259 = vadd.xlane.f32.xlu2 %v867_v55 }
  0x8c   :  { %872 = vpow2.f32 %v215_v50 }
  0x8d   :  { %v1189_v56 = vpop.xlane.xlu2 %154  ;;  %v1191_v58 = vpop.xlane.xlu1 %152  ;;  %874 = vpow2.f32 %v221_v57 }
  0x8e   :  { %1716 = vst [vmem:[#allocation7_spill] sm:$0xff] %v1189_v56  ;;  %v193_v59 = vsub.f32 %v1060_v9, %v1189_v56  ;;  %v1195_v60 = vpop.xlane.xlu0 %150  ;;  %v192_v30 = vsub.f32 %v1065_v10, %v1191_v58 }
  0x8f   :  { %1717 = vst [vmem:[#allocation8_spill] sm:$0xff] %v1195_v60  ;;  %v191_v61 = vsub.f32 %v1070_v11, %v1195_v60 }
  0x90   :  { %v869_v62 = vpop.eup %868  ;;  %v229_v63 = vmul.f32 1.442695, %v193_v59  ;;  %v227_v35 = vmul.f32 1.442695, %v192_v30 }
  0x91   :  { %v871_v27 = vpop.eup %870  ;;  %v225_v29 = vmul.f32 1.442695, %v191_v61  ;;  %273 = vadd.xlane.f32.xlu0 %v869_v62 }
  0x92   :  { %v873_v31 = vpop.eup %872  ;;  %876 = vpow2.f32 %v229_v63  ;;  %269 = vadd.xlane.f32.xlu1 %v871_v27 }
  0x93   :  { %878 = vpow2.f32 %v225_v29  ;;  %265 = vadd.xlane.f32.xlu2 %v873_v31  ;;  %v875_v40 = vpop.eup %874  ;;  %v984_v29 = vmov 0  }
  0x94   :  { %880 = vpow2.f32 %v227_v35  ;;  %856 = vset.pattern.permute.xlu0 %v984_v29  ;;  %857 = vset.pattern.permute.xlu1 %v984_v29 }
  0x95   :  { %v1201_v34 = vpop.xlane.xlu2 %160  ;;  %v1203_v37 = vpop.xlane.xlu1 %158  ;;  %855 = vset.pattern.permute.xlu2 %v984_v29 }
  0x96   :  { %1718 = vst [vmem:[#allocation9_spill] sm:$0xff] %v1201_v34  ;;  %v196_v38 = vsub.f32 %v1078_v12, %v1201_v34  ;;  %v1207_v39 = vpop.xlane.xlu0 %156  ;;  %v195_v49 = vsub.f32 %v1083_v13, %v1203_v37  ;;  %v1370_v34 = vld [vmem:[%s1675_s1 + $0xb8] sm:$0xff] }
  0x97   :  { %1719 = vst [vmem:[#allocation10_spill] sm:$0xff] %v1203_v37  ;;  %v194_v41 = vsub.f32 %v1088_v14, %v1207_v39 }
  0x98   :  { %1720 = vst [vmem:[#allocation11_spill] sm:$0xff] %v1207_v39  ;;  %v877_v42 = vpop.eup %876  ;;  %v235_v43 = vmul.f32 1.442695, %v196_v38  ;;  %v233_v51 = vmul.f32 1.442695, %v195_v49 }
  0x99   :  { %v879_v46 = vpop.eup %878  ;;  %v231_v48 = vmul.f32 1.442695, %v194_v41  ;;  %279 = vadd.xlane.f32.xlu0 %v877_v42  ;;  %1743 = vst [vmem:[#allocation34_spill] sm:$0xff] %v1370_v34 }
  0x9a   :  { %882 = vpow2.f32 %v235_v43  ;;  %275 = vadd.xlane.f32.xlu1 %v879_v46  ;;  %v881_v55 = vpop.eup %880 }
  0x9b   :  { %884 = vpow2.f32 %v231_v48  ;;  %271 = vadd.xlane.f32.xlu2 %v875_v40 }
  0x9c   :  { %886 = vpow2.f32 %v233_v51 }
  0x9d   :  { %v1213_v50 = vpop.xlane.xlu2 %166  ;;  %v1215_v52 = vpop.xlane.xlu1 %164 }
  0x9e   :  { %1721 = vst [vmem:[#allocation12_spill] sm:$0xff] %v1213_v50  ;;  %v199_v53 = vsub.f32 %v1096_v15, %v1213_v50  ;;  %v1219_v54 = vpop.xlane.xlu0 %162  ;;  %v198_v27 = vsub.f32 %v1101_v16, %v1215_v52  ;;  %v1348_v50 = vld [vmem:[%s1675_s1 + $0x98] sm:$0xff] }
  0x9f   :  { %1722 = vst [vmem:[#allocation13_spill] sm:$0xff] %v1215_v52  ;;  %v197_v57 = vsub.f32 %v1106_v17, %v1219_v54 }
  0xa0   :  { %1723 = vst [vmem:[#allocation14_spill] sm:$0xff] %v1219_v54  ;;  %v883_v59 = vpop.eup %882  ;;  %v241_v61 = vmul.f32 1.442695, %v199_v53  ;;  %v239_v31 = vmul.f32 1.442695, %v198_v27 }
  0xa1   :  { %v885_v62 = vpop.eup %884  ;;  %v237_v63 = vmul.f32 1.442695, %v197_v57  ;;  %285 = vadd.xlane.f32.xlu0 %v883_v59  ;;  %1738 = vst [vmem:[#allocation29_spill] sm:$0xff] %v1348_v50 }
  0xa2   :  { %888 = vpow2.f32 %v241_v61  ;;  %281 = vadd.xlane.f32.xlu1 %v885_v62  ;;  %v887_v41 = vpop.eup %886 }
  0xa3   :  { %890 = vpow2.f32 %v237_v63  ;;  %277 = vadd.xlane.f32.xlu2 %v881_v55 }
  0xa4   :  { %892 = vpow2.f32 %v239_v31 }
  0xa5   :  { %v1225_v30 = vpop.xlane.xlu2 %172  ;;  %v1227_v35 = vpop.xlane.xlu1 %170 }
  0xa6   :  { %1724 = vst [vmem:[#allocation15_spill] sm:$0xff] %v1225_v30  ;;  %v202_v38 = vsub.f32 %v1114_v18, %v1225_v30  ;;  %v1231_v40 = vpop.xlane.xlu0 %168  ;;  %v201_v51 = vsub.f32 %v1119_v19, %v1227_v35 }
  0xa7   :  { %1725 = vst [vmem:[#allocation16_spill] sm:$0xff] %v1227_v35  ;;  %v200_v42 = vsub.f32 %v1124_v20, %v1231_v40 }
  0xa8   :  { %1726 = vst [vmem:[#allocation17_spill] sm:$0xff] %v1231_v40  ;;  %v889_v43 = vpop.eup %888  ;;  %v247_v46 = vmul.f32 1.442695, %v202_v38  ;;  %v245_v55 = vmul.f32 1.442695, %v201_v51 }
  0xa9   :  { %v891_v48 = vpop.eup %890  ;;  %v243_v49 = vmul.f32 1.442695, %v200_v42  ;;  %291 = vadd.xlane.f32.xlu0 %v889_v43 }
  0xaa   :  { %894 = vpow2.f32 %v247_v46  ;;  %287 = vadd.xlane.f32.xlu1 %v891_v48  ;;  %v893_v61 = vpop.eup %892 }
  0xab   :  { %896 = vpow2.f32 %v243_v49  ;;  %283 = vadd.xlane.f32.xlu2 %v887_v41 }
  0xac   :  { %898 = vpow2.f32 %v245_v55 }
  0xad   :  { %v1237_v53 = vpop.xlane.xlu2 %178  ;;  %v1245_v63 = vpop.xlane.xlu1 %176 }
  0xae   :  { %1727 = vst [vmem:[#allocation18_spill] sm:$0xff] %v1237_v53  ;;  %v205_v57 = vsub.f32 %v1132_v21, %v1237_v53  ;;  %v1241_v59 = vpop.xlane.xlu0 %174  ;;  %v204_v41 = vsub.f32 %v1137_v22, %v1245_v63 }
  0xaf   :  { %1728 = vst [vmem:[#allocation19_spill] sm:$0xff] %v1241_v59  ;;  %v203_v62 = vsub.f32 %v1142_v23, %v1241_v59  ;;  %v1338_v59 = vld [vmem:[%s1675_s1 + $0x80] sm:$0xff] }
  0xb0   :  { %1729 = vst [vmem:[#allocation20_spill] sm:$0xff] %v1245_v63  ;;  %v895_v27 = vpop.eup %894  ;;  %v253_v29 = vmul.f32 1.442695, %v205_v57  ;;  %v251_v42 = vmul.f32 1.442695, %v204_v41  ;;  %v1286_v41 = vld [vmem:[%s1675_s1 + $0x28] sm:$0xff] }
  0xb1   :  { %v897_v31 = vpop.eup %896  ;;  %v249_v38 = vmul.f32 1.442695, %v203_v62  ;;  %297 = vadd.xlane.f32.xlu0 %v895_v27  ;;  %v1262_v27 = vld [vmem:[%s1675_s1 + $0x40] sm:$0xff]  ;;  %1737 = vst [vmem:[#allocation28_spill] sm:$0xff] %v1338_v59  ;;  %vm693_vm14 = vcmp.ne.s32.totalorder %v1286_v41, 3 }
  0xb2   :  { %900 = vpow2.f32 %v253_v29  ;;  %293 = vadd.xlane.f32.xlu1 %v897_v31  ;;  %v899_v46 = vpop.eup %898  ;;  %1731 = vst [vmem:[#allocation22_spill] sm:$0xff] %v1262_v27  ;;  %v1268_v29 = vld [vmem:[%s1675_s1] sm:$0xff]  ;;  %v1273_v31 = vld [vmem:[%s1675_s1 + $0x10] sm:$0xff] }
  0xb3   :  { %902 = vpow2.f32 %v249_v38  ;;  %289 = vadd.xlane.f32.xlu2 %v893_v61  ;;  %v1256_v61 = vld [vmem:[%s1675_s1 + $0x8] sm:$0xff]  ;;  %v1278_v38 = vld [vmem:[%s1675_s1 + $0x58] sm:$0xff]  ;;  %vm688_vm6 = vcmp.ne.s32.totalorder %v1268_v29, 3  ;;  %vm690_vm11 = vcmp.ne.s32.totalorder %v1273_v31, 3 }
  0xb4   :  { %904 = vpow2.f32 %v251_v42  ;;  %1732 = vst [vmem:[#allocation23_spill] sm:$0xff] %v1278_v38  ;;  %v1291_v42 = vld [vmem:[%s1675_s1 + $0x70] sm:$0xff]  ;;  %vm689_vm7 = vcmp.ne.s32.totalorder %v1256_v61, 3 }
  0xb5   :  { %1733 = vst [vmem:[#allocation24_spill] sm:$0xff] %v1291_v42 }
  0xb6   :  { %v1249_v43 = vpop.xlane.xlu0 %180 }
  0xb7   :  { %1730 = vst [vmem:[#allocation21_spill] sm:$0xff] %v1249_v43  ;;  %v206_v48 = vsub.f32 %v1150_v24, %v1249_v43 }
  0xb8   :  { %v901_v49 = vpop.eup %900 }
  0xb9   :  { %v903_v51 = vpop.eup %902  ;;  %v255_v57 = vmul.f32 1.442695, %v206_v48  ;;  %303 = vadd.xlane.f32.xlu0 %v901_v49  ;;  %v1303_v48 = vld [vmem:[%s1675_s1 + $0x88] sm:$0xff]  ;;  %v1310_v49 = vld [vmem:[%s1675_s1 + $0x50] sm:$0xff] }
  0xba   :  { %299 = vadd.xlane.f32.xlu1 %v903_v51  ;;  %v905_v55 = vpop.eup %904  ;;  %1734 = vst [vmem:[#allocation25_spill] sm:$0xff] %v1303_v48  ;;  %v1315_v51 = vld [vmem:[%s1675_s1 + $0xa0] sm:$0xff] }
  0xbb   :  { %906 = vpow2.f32 %v255_v57  ;;  %295 = vadd.xlane.f32.xlu2 %v899_v46  ;;  %v1298_v46 = vld [vmem:[%s1675_s1 + $0x38] sm:$0xff]  ;;  %1735 = vst [vmem:[#allocation26_spill] sm:$0xff] %v1315_v51 }
  0xc1   :  { %v907_v62 = vpop.eup %906 }
  0xc2   :  { %305 = vadd.xlane.f32.xlu1 %v907_v62  ;;  %v1326_v62 = vld [vmem:[%s1675_s1 + $0x68] sm:$0xff] }
  0xc3   :  { %301 = vadd.xlane.f32.xlu2 %v905_v55  ;;  %1736 = vst [vmem:[#allocation27_spill] sm:$0xff] %v1326_v62 }
  0xcd   :  { %388 = vperm.xlu0 %856, %v1256_v61  }
  0xd5   :  { %409 = vperm.xlu0 %856, %v1262_v27  }
  0xdb   :  { %385 = vperm.xlu2 %855, %v1268_v29   ;;  %391 = vperm.xlu1 %857, %v1273_v31  }
  0xdd   :  { %418 = vperm.xlu0 %856, %v1278_v38  }
  0xe3   :  { %400 = vperm.xlu1 %857, %v1286_v41  }
  0xe5   :  { %427 = vperm.xlu0 %856, %v1291_v42  }
  0xeb   :  { %406 = vperm.xlu1 %857, %v1298_v46  }
  0xed   :  { %436 = vperm.xlu0 %856, %v1303_v48  }
  0xf3   :  { %415 = vperm.xlu1 %857, %v1310_v49  }
  0xf4   :  { %v1318_v57 = vpop.xlane.xlu0 %261 }
  0xf5   :  { %v1320_v55 = vpop.xlane.xlu1 %257  ;;  %445 = vperm.xlu0 %856, %v1315_v51  }
  0xf6   :  { %908 = vlog2.f32 %v1320_v55 }
  0xfb   :  { %424 = vperm.xlu1 %857, %v1326_v62  }
  0xfc   :  { %v1329_v63 = vpop.xlane.xlu0 %267 }
  0xfd   :  { %v1333_v35 = vpop.xlane.xlu1 %263 }
  0xfe   :  { %v1331_v43 = vpop.xlane.xlu2 %259 }
  0xff   :  { %910 = vlog2.f32 %v1331_v43 }
 0x100   :  { %912 = vlog2.f32 %v1318_v57 }
 0x101   :  { %914 = vlog2.f32 %v1329_v63 }
 0x103   :  { %433 = vperm.xlu1 %857, %v1338_v59   ;;  %v1360_v59 = vld [vmem:[%s1675_s1 + $0xb0] sm:$0xff] }
 0x104   :  { %v1343_v40 = vpop.xlane.xlu0 %273  ;;  %1741 = vst [vmem:[#allocation32_spill] sm:$0xff] %v1360_v59 }
 0x105   :  { %v1350_v54 = vpop.xlane.xlu1 %269 }
 0x106   :  { %v1341_v48 = vpop.xlane.xlu2 %265  ;;  %1739 = vst [vmem:[#allocation30_spill] sm:$0xff] %v1350_v54 }
 0x10b   :  { %442 = vperm.xlu1 %857, %v1348_v50  }
 0x10c   :  { %v1355_v62 = vpop.xlane.xlu0 %279 }
 0x10d   :  { %1740 = vst [vmem:[#allocation31_spill] sm:$0xff] %v1355_v62  ;;  %v1362_v42 = vpop.xlane.xlu1 %275 }
 0x10e   :  { %v1353_v52 = vpop.xlane.xlu2 %271  ;;  %1742 = vst [vmem:[#allocation33_spill] sm:$0xff] %v1362_v42 }
 0x10f   :  { %916 = vlog2.f32 %v1353_v52 }
 0x113   :  { %451 = vperm.xlu1 %857, %v1360_v59  }
 0x114   :  { %v1372_v50 = vpop.xlane.xlu0 %285 }
 0x115   :  { %1744 = vst [vmem:[#allocation35_spill] sm:$0xff] %v1372_v50  ;;  %v1375_v38 = vpop.xlane.xlu1 %281  ;;  %v382_v50 = vlaneseq }
 0x116   :  { %v1365_v37 = vpop.xlane.xlu2 %277  ;;  %1745 = vst [vmem:[#allocation36_spill] sm:$0xff] %v1375_v38 }
 0x117   :  { %v1395_v38 = vand.u32 127, %v382_v50  ;;  %918 = vlog2.f32 %v1365_v37 }
 0x118   :  { %920 = vlog2.f32 %v1333_v35  ;;  %v1765_v35 = vld [vmem:[#allocation22_spill] sm:$0xff] }
 0x119   :  { %922 = vlog2.f32 %v1343_v40 }
 0x11a   :  { %924 = vlog2.f32 %v1341_v48 }
 0x11b   :  { %454 = vperm.xlu1 %857, %v1370_v34  }
 0x11c   :  { %v1379_v39 = vpop.xlane.xlu0 %291 }
 0x11d   :  { %1747 = vst [vmem:[#allocation38_spill] sm:$0xff] %v1379_v39  ;;  %v1383_v59 = vpop.xlane.xlu1 %287 }
 0x11e   :  { %v1377_v56 = vpop.xlane.xlu2 %283  ;;  %1749 = vst [vmem:[#allocation40_spill] sm:$0xff] %v1383_v59 }
 0x11f   :  { %1746 = vst [vmem:[#allocation37_spill] sm:$0xff] %v1377_v56 }
 0x124   :  { %v1385_v62 = vpop.xlane.xlu0 %297 }
 0x125   :  { %v1389_v47 = vpop.xlane.xlu1 %293  ;;  %926 = vlog2.f32 %v1385_v62 }
 0x126   :  { %v1381_v60 = vpop.xlane.xlu2 %289  ;;  %1751 = vst [vmem:[#allocation42_spill] sm:$0xff] %v1389_v47 }
 0x127   :  { %1748 = vst [vmem:[#allocation39_spill] sm:$0xff] %v1381_v60  ;;  %v1703_v60 = vmov 0.0007874016  }
 0x12c   :  { %v1393_v34 = vpop.xlane.xlu0 %303 }
 0x12d   :  { %1753 = vst [vmem:[#allocation44_spill] sm:$0xff] %v1393_v34  ;;  %v1397_v56 = vpop.xlane.xlu1 %299 }
 0x12e   :  { %v1387_v53 = vpop.xlane.xlu2 %295  ;;  %1754 = vst [vmem:[#allocation45_spill] sm:$0xff] %v1397_v56 }
 0x12f   :  { %1750 = vst [vmem:[#allocation41_spill] sm:$0xff] %v1387_v53 }
 0x135   :  { %v1405_v50 = vpop.xlane.xlu1 %305 }
 0x136   :  { %v1391_v42 = vpop.xlane.xlu2 %301  ;;  %1755 = vst [vmem:[#allocation46_spill] sm:$0xff] %v1405_v50 }
 0x137   :  { %1752 = vst [vmem:[#allocation43_spill] sm:$0xff] %v1391_v42 }
 0x13e   :  { %v386_v39 = vpop.permute.xlu2 %385 }
 0x13f   :  { %vm459_vm0 = vcmp.eq.s32.totalorder %v1395_v38, %v386_v39  ;;  %v389_v51 = vpop.permute.xlu0 %388 }
 0x140   :  { %v484_v59 = vsel %vm459_vm0, 0.9, %v1703_v60  ;;  %vm460_vm1 = vcmp.eq.s32.totalorder %v1395_v38, %v389_v51  ;;  %v1446_v51 = vld [vmem:[%s1675_s1 + $0x60] sm:$0xff] }
 0x141   :  { %v509_v53 = vmul.f32 %v484_v59, %v1016_v2  ;;  %v485_v42 = vsel %vm460_vm1, 0.9, %v1703_v60  ;;  %1759 = vst [vmem:[#allocation50_spill] sm:$0xff] %v1446_v51  ;;  %vm695_vm1 = vcmp.ne.s32.totalorder %v1298_v46, 3 }
 0x142   :  { %v510_v47 = vmul.f32 %v485_v42, %v1034_v5  ;;  %v1416_v5 = vld [vmem:[%s1675_s1 + $0x18] sm:$0xff]  ;;  %v1434_v42 = vld [vmem:[%s1675_s1 + $0x30] sm:$0xff] }
 0x143   :  { %534 = vadd.xlane.f32.xlu0 %v509_v53  ;;  %1757 = vst [vmem:[#allocation48_spill] sm:$0xff] %v1434_v42 }
 0x144   :  { %536 = vadd.xlane.f32.xlu2 %v510_v47 }
 0x14d   :  { %v392_v56 = vpop.permute.xlu1 %391 }
 0x14e   :  { %vm461_vm2 = vcmp.eq.s32.totalorder %v1395_v38, %v392_v56 }
 0x14f   :  { %v486_v39 = vsel %vm461_vm2, 0.9, %v1703_v60 }
 0x150   :  { %v511_v30 = vmul.f32 %v486_v39, %v1011_v1  ;;  %v410_v39 = vpop.permute.xlu0 %409 }
 0x151   :  { %vm467_vm9 = vcmp.eq.s32.totalorder %v1395_v38, %v410_v39 }
 0x152   :  { %538 = vadd.xlane.f32.xlu1 %v511_v30 }
 0x155   :  { %v401_v25 = vpop.permute.xlu1 %400 }
 0x156   :  { %vm464_vm3 = vcmp.eq.s32.totalorder %v1395_v38, %v401_v25  ;;  %v1425_v25 = vld [vmem:[%s1675_s1 + $0x20] sm:$0xff] }
 0x157   :  { %v489_v2 = vsel %vm464_vm3, 0.9, %v1703_v60  ;;  %1756 = vst [vmem:[#allocation47_spill] sm:$0xff] %v1425_v25 }
 0x158   :  { %v514_v53 = vmul.f32 %v489_v2, %v1024_v3  ;;  %v1458_v2 = vld [vmem:[%s1675_s1 + $0x90] sm:$0xff] }
 0x159   :  { %1761 = vst [vmem:[#allocation52_spill] sm:$0xff] %v1458_v2 }
 0x15a   :  { %544 = vadd.xlane.f32.xlu1 %v514_v53  ;;  %v1461_v53 = vpop.permute.xlu0 %418 }
 0x15b   :  { %vm470_vm3 = vcmp.eq.s32.totalorder %v1395_v38, %v1461_v53 }
 0x15c   :  { %394 = vperm.xlu2 %855, %v1416_v5  }
 0x15d   :  { %v407_v47 = vpop.permute.xlu1 %406 }
 0x15e   :  { %vm466_vm4 = vcmp.eq.s32.totalorder %v1395_v38, %v407_v47  ;;  %v1466_v47 = vld [vmem:[%s1675_s1 + $0xa8] sm:$0xff] }
 0x15f   :  { %v491_v1 = vsel %vm466_vm4, 0.9, %v1703_v60  ;;  %1762 = vst [vmem:[#allocation53_spill] sm:$0xff] %v1466_v47  ;;  %vm698_vm4 = vcmp.ne.s32.totalorder %v1310_v49, 3 }
 0x160   :  { %v516_v56 = vmul.f32 %v491_v1, %v1047_v7  ;;  %v1440_v7 = vld [vmem:[%s1675_s1 + $0x48] sm:$0xff] }
 0x161   :  { %1758 = vst [vmem:[#allocation49_spill] sm:$0xff] %v1440_v7 }
 0x162   :  { %548 = vadd.xlane.f32.xlu1 %v516_v56  ;;  %v1471_v56 = vpop.permute.xlu0 %427 }
 0x164   :  { %397 = vperm.xlu2 %855, %v1425_v25  }
 0x165   :  { %v416_v3 = vpop.permute.xlu1 %415 }
 0x166   :  { %vm469_vm5 = vcmp.eq.s32.totalorder %v1395_v38, %v416_v3  ;;  %v1476_v3 = vld [vmem:[%s1675_s1 + $0xc0] sm:$0xff] }
 0x167   :  { %v494_v30 = vsel %vm469_vm5, 0.9, %v1703_v60  ;;  %1763 = vst [vmem:[#allocation54_spill] sm:$0xff] %v1476_v3 }
 0x168   :  { %v519_v59 = vmul.f32 %v494_v30, %v1065_v10  ;;  %v1452_v10 = vld [vmem:[%s1675_s1 + $0x78] sm:$0xff]  ;;  %s987_s1 = smov [#allocation2]  }
 0x169   :  { %1760 = vst [vmem:[#allocation51_spill] sm:$0xff] %v1452_v10  ;;  %s828_s23 = sshll.u32 %s987_s1, 4  ;;  %s829_s23 = int_to_ptr.vmem [resolvable:$true] %s828_s23 }
 0x16a   :  { %554 = vadd.xlane.f32.xlu1 %v519_v59  ;;  %v1481_v59 = vpop.permute.xlu0 %436 }
 0x16c   :  { %403 = vperm.xlu2 %855, %v1434_v42  }
 0x16d   :  { %v1468_v1 = vpop.permute.xlu1 %424 }
 0x172   :  { %v446_v50 = vpop.permute.xlu0 %445 }
 0x173   :  { %vm479_vm12 = vcmp.eq.s32.totalorder %v1395_v38, %v446_v50 }
 0x174   :  { %412 = vperm.xlu2 %855, %v1440_v7  }
 0x175   :  { %v1479_v30 = vpop.permute.xlu1 %433 }
 0x17c   :  { %421 = vperm.xlu2 %855, %v1446_v51  }
 0x17d   :  { %v1484_v60 = vpop.permute.xlu1 %442 }
 0x184   :  { %430 = vperm.xlu2 %855, %v1452_v10  }
 0x185   :  { %v1487_v51 = vpop.permute.xlu1 %451 }
 0x18c   :  { %439 = vperm.xlu2 %855, %v1458_v2  }
 0x194   :  { %448 = vperm.xlu2 %855, %v1466_v47   ;;  %v909_v47 = vpop.eup %908 }
 0x195   :  { %v911_v2 = vpop.eup %910  ;;  %v308_v10 = vmul.f32 0.6931472, %v909_v47 }
 0x196   :  { %v310_v7 = vmul.f32 0.6931472, %v911_v2  ;;  %v913_v29 = vpop.eup %912 }
 0x197   :  { %v357_v42 = vadd.f32 %v308_v10, %v1159_v28  ;;  %v455_v28 = vpop.permute.xlu1 %454  ;;  %v312_v61 = vmul.f32 0.6931472, %v913_v29 }
 0x198   :  { %v358_v34 = vadd.f32 %v310_v7, %v1171_v36  ;;  %vm482_vm15 = vcmp.eq.s32.totalorder %v1395_v38, %v455_v28 }
 0x199   :  { %v359_v7 = vadd.f32 %v312_v61, %v1155_v26 }
 0x19c   :  { %457 = vperm.xlu2 %855, %v1476_v3  }
 0x1b6   :  { %v535_v3 = vpop.xlane.xlu0 %534 }
 0x1b7   :  { %v584_v25 = vsub.f32 %v357_v42, %v535_v3  ;;  %v537_v43 = vpop.xlane.xlu2 %536  ;;  %v1764_v42 = vmov 0.0007874016  }
 0x1b8   :  { %v585_v54 = vsub.f32 %v358_v34, %v537_v43  ;;  %v492_v57 = vsel %vm467_vm9, 0.9, %v1764_v42  ;;  %vm475_vm9 = vcmp.eq.s32.totalorder %v1395_v38, %v1479_v30 }
 0x1b9   :  { %v738_v55 = vsel %vm688_vm6, %v584_v25, 0.0  ;;  %v517_v25 = vmul.f32 %v492_v57, %v1042_v6  ;;  %v507_v57 = vsel %vm482_vm15, 0.9, %v1764_v42  ;;  %vm473_vm6 = vcmp.eq.s32.totalorder %v1395_v38, %v1471_v56 }
 0x1ba   :  { %v739_v47 = vsel %vm689_vm7, %v585_v54, 0.0  ;;  %v764_v27 = vsel %vm763_vm8, %v738_v55, 0.0  ;;  %v504_v55 = vsel %vm479_vm12, 0.9, %v1764_v42  ;;  %v532_v41 = vmul.f32 %v507_v57, %v1132_v21 }
 0x1bb   :  { %v765_v2 = vsel %vm763_vm8, %v739_v47, 0.0  ;;  %v529_v50 = vmul.f32 %v504_v55, %v1114_v18  ;;  %vm472_vm7 = vcmp.eq.s32.totalorder %v1395_v38, %v1468_v1  ;;  %vm481_vm15 = vcmp.eq.s32.totalorder %v1395_v38, %v1487_v51 }
 0x1bc   :  { %v766_v10 = vadd.f32 %v765_v2, %v764_v27  ;;  %v915_v27 = vpop.eup %914  ;;  %v497_v49 = vsel %vm472_vm7, 0.9, %v1764_v42 }
 0x1bd   :  { %v318_v43 = vmul.f32 0.6931472, %v915_v27  ;;  %v917_v52 = vpop.eup %916 }
 0x1bf   :  { %v395_v36 = vpop.permute.xlu2 %394  ;;  %v362_v2 = vadd.f32 %v318_v43, %v1163_v32 }
 0x1c0   :  { %vm462_vm10 = vcmp.eq.s32.totalorder %v1395_v38, %v395_v36 }
 0x1c1   :  { %v487_v34 = vsel %vm462_vm10, 0.9, %v1764_v42 }
 0x1c2   :  { %v512_v54 = vmul.f32 %v487_v34, %v1029_v4  ;;  %v919_v34 = vpop.eup %918 }
 0x1c4   :  { %540 = vadd.xlane.f32.xlu0 %v512_v54 }
 0x1c5   :  { %v539_v63 = vpop.xlane.xlu1 %538  ;;  %550 = vadd.xlane.f32.xlu2 %v517_v25 }
 0x1c6   :  { %v586_v39 = vsub.f32 %v359_v7, %v539_v63  ;;  %v328_v7 = vmul.f32 0.6931472, %v919_v34 }
 0x1c7   :  { %v398_v3 = vpop.permute.xlu2 %397 }
 0x1c8   :  { %v740_v4 = vsel %vm690_vm11, %v586_v39, 0.0  ;;  %vm463_vm13 = vcmp.eq.s32.totalorder %v1395_v38, %v398_v3  ;;  %v367_v21 = vadd.f32 %v328_v7, %v1191_v58  ;;  %v495_v39 = vsel %vm470_vm3, 0.9, %v1764_v42 }
 0x1c9   :  { %v767_v6 = vsel %vm763_vm8, %v740_v4, 0.0  ;;  %v488_v26 = vsel %vm463_vm13, 0.9, %v1764_v42  ;;  %v520_v53 = vmul.f32 %v495_v39, %v1060_v9  ;;  %v498_v58 = vsel %vm473_vm6, 0.9, %v1764_v42 }
 0x1ca   :  { %v1511_v47 = vadd.f32 %v767_v6, %v766_v10  ;;  %v513_v31 = vmul.f32 %v488_v26, %v1006_v0  ;;  %v322_v10 = vmul.f32 0.6931472, %v917_v52  ;;  %v522_v6 = vmul.f32 %v497_v49, %v1083_v13 }
 0x1cb   :  { %v523_v26 = vmul.f32 %v498_v58, %v1078_v12  ;;  %v500_v9 = vsel %vm475_vm9, 0.9, %v1764_v42  ;;  %vm476_vm11 = vcmp.eq.s32.totalorder %v1395_v38, %v1481_v59  ;;  %vm478_vm13 = vcmp.eq.s32.totalorder %v1395_v38, %v1484_v60 }
 0x1cc   :  { %542 = vadd.xlane.f32.xlu0 %v513_v31  ;;  %v364_v28 = vadd.f32 %v322_v10, %v1179_v45  ;;  %v525_v31 = vmul.f32 %v500_v9, %v1101_v16  ;;  %v501_v12 = vsel %vm476_vm11, 0.9, %v1764_v42  ;;  %v503_v16 = vsel %vm478_vm13, 0.9, %v1764_v42 }
 0x1cd   :  { %v545_v29 = vpop.xlane.xlu1 %544  ;;  %574 = vadd.xlane.f32.xlu2 %v529_v50 }
 0x1ce   :  { %v589_v36 = vsub.f32 %v362_v2, %v545_v29  ;;  %v526_v2 = vmul.f32 %v501_v12, %v1096_v15  ;;  %v528_v29 = vmul.f32 %v503_v16, %v1119_v19  ;;  %v506_v15 = vsel %vm481_vm15, 0.9, %v1764_v42  ;;  %v921_v19 = vpop.eup %920  ;;  %v1775_v12 = vld [vmem:[#allocation18_spill] sm:$0xff] }
 0x1cf   :  { %v404_v61 = vpop.permute.xlu2 %403  ;;  %vm80_vm15 = vcmask 0  }
 0x1d0   :  { %v1520_v0 = vsel %vm693_vm14, %v589_v36, 0.0  ;;  %vm465_vm0 = vcmp.eq.s32.totalorder %v1395_v38, %v404_v61  ;;  %v531_v36 = vmul.f32 %v506_v15, %v1137_v22 }
 0x1d1   :  { %v490_v18 = vsel %vm465_vm0, 0.9, %v1764_v42 }
 0x1d2   :  { %v515_v32 = vmul.f32 %v490_v18, %v1052_v8  ;;  %v1766_v18 = vld [vmem:[#allocation30_spill] sm:$0xff] }
 0x1d3   :  { %928 = vlog2.f32 %v1766_v18 }
 0x1d4   :  { %546 = vadd.xlane.f32.xlu0 %v515_v32 }
 0x1d5   :  { %v549_v37 = vpop.xlane.xlu1 %548  ;;  %580 = vadd.xlane.f32.xlu2 %v532_v41  ;;  %v1767_v41 = vld [vmem:[#allocation44_spill] sm:$0xff] }
 0x1d6   :  { %v591_v54 = vsub.f32 %v364_v28, %v549_v37  ;;  %930 = vlog2.f32 %v1767_v41  ;;  %v1768_v37 = vld [vmem:[#allocation5_spill] sm:$0xff] }
 0x1d7   :  { %v413_v25 = vpop.permute.xlu2 %412 }
 0x1d8   :  { %v1528_v27 = vsel %vm695_vm1, %v591_v54, 0.0  ;;  %vm468_vm2 = vcmp.eq.s32.totalorder %v1395_v38, %v413_v25  ;;  %vm691_vm1 = vcmp.ne.s32.totalorder %v1416_v5, 3  ;;  %v1769_v25 = vld [vmem:[#allocation47_spill] sm:$0xff] }
 0x1d9   :  { %v493_v63 = vsel %vm468_vm2, 0.9, %v1764_v42  ;;  %vm696_vm2 = vcmp.ne.s32.totalorder %v1765_v35, 3  ;;  %vm692_vm3 = vcmp.ne.s32.totalorder %v1769_v25, 3  ;;  %v1786_v25 = vld [vmem:[#allocation50_spill] sm:$0xff] }
 0x1da   :  { %v518_v8 = vmul.f32 %v493_v63, %v1070_v11  ;;  %v1770_v63 = vld [vmem:[#allocation15_spill] sm:$0xff] }
 0x1dc   :  { %552 = vadd.xlane.f32.xlu0 %v518_v8 }
 0x1dd   :  { %v555_v45 = vpop.xlane.xlu1 %554 }
 0x1de   :  { %v594_v46 = vsub.f32 %v367_v21, %v555_v45  ;;  %v1771_v45 = vld [vmem:[#allocation26_spill] sm:$0xff] }
 0x1df   :  { %v422_v3 = vpop.permute.xlu2 %421 }
 0x1e0   :  { %v1538_v43 = vsel %vm698_vm4, %v594_v46, 0.0  ;;  %vm471_vm5 = vcmp.eq.s32.totalorder %v1395_v38, %v422_v3  ;;  %vm708_vm4 = vcmp.ne.s32.totalorder %v1771_v45, 3  ;;  %v1772_v3 = vld [vmem:[#allocation33_spill] sm:$0xff] }
 0x1e1   :  { %v496_v55 = vsel %vm471_vm5, 0.9, %v1764_v42  ;;  %932 = vlog2.f32 %v1772_v3  ;;  %v783_v41 = vsel %vm763_vm8, %v1538_v43, 0.0 }
 0x1e2   :  { %v521_v11 = vmul.f32 %v496_v55, %v1088_v14 }
 0x1e4   :  { %558 = vadd.xlane.f32.xlu1 %v521_v11  ;;  %556 = vadd.xlane.f32.xlu0 %v520_v53 }
 0x1e7   :  { %v431_v4 = vpop.permute.xlu2 %430 }
 0x1e8   :  { %vm474_vm10 = vcmp.eq.s32.totalorder %v1395_v38, %v431_v4 }
 0x1e9   :  { %v499_v14 = vsel %vm474_vm10, 0.9, %v1764_v42  ;;  %vm700_vm10 = vcmp.ne.s32.totalorder %v1786_v25, 3 }
 0x1ea   :  { %v524_v56 = vmul.f32 %v499_v14, %v1106_v17 }
 0x1ec   :  { %560 = vadd.xlane.f32.xlu0 %v522_v6  ;;  %562 = vadd.xlane.f32.xlu1 %v523_v26  ;;  %v773_v6 = vsel %vm763_vm8, %v1520_v0, 0.0  ;;  %v1773_v26 = vld [vmem:[#allocation6_spill] sm:$0xff] }
 0x1ef   :  { %v440_v1 = vpop.permute.xlu2 %439 }
 0x1f0   :  { %vm477_vm12 = vcmp.eq.s32.totalorder %v1395_v38, %v440_v1 }
 0x1f1   :  { %v502_v13 = vsel %vm477_vm12, 0.9, %v1764_v42 }
 0x1f2   :  { %v527_v50 = vmul.f32 %v502_v13, %v1124_v20 }
 0x1f4   :  { %564 = vadd.xlane.f32.xlu0 %v524_v56  ;;  %566 = vadd.xlane.f32.xlu1 %v525_v31  ;;  %v1774_v56 = vld [vmem:[#allocation48_spill] sm:$0xff] }
 0x1f5   :  { %vm694_vm5 = vcmp.ne.s32.totalorder %v1774_v56, 3  ;;  %v1791_v56 = vld [vmem:[#allocation24_spill] sm:$0xff] }
 0x1f6   :  { %vm702_vm11 = vcmp.ne.s32.totalorder %v1791_v56, 3 }
 0x1f7   :  { %v449_v30 = vpop.permute.xlu2 %448 }
 0x1f8   :  { %vm480_vm14 = vcmp.eq.s32.totalorder %v1395_v38, %v449_v30  ;;  %v1776_v30 = vld [vmem:[#allocation31_spill] sm:$0xff] }
 0x1f9   :  { %v505_v17 = vsel %vm480_vm14, 0.9, %v1764_v42  ;;  %934 = vlog2.f32 %v1776_v30  ;;  %v1793_v30 = vld [vmem:[#allocation38_spill] sm:$0xff] }
 0x1fa   :  { %v530_v52 = vmul.f32 %v505_v17, %v1142_v23  ;;  %v923_v23 = vpop.eup %922  ;;  %v1778_v17 = vld [vmem:[#allocation36_spill] sm:$0xff] }
 0x1fb   :  { %v324_v51 = vmul.f32 0.6931472, %v923_v23  ;;  %v925_v61 = vpop.eup %924  ;;  %936 = vlog2.f32 %v1778_v17  ;;  %v1779_v23 = vld [vmem:[#allocation8_spill] sm:$0xff] }
 0x1fc   :  { %570 = vadd.xlane.f32.xlu1 %v527_v50  ;;  %568 = vadd.xlane.f32.xlu0 %v526_v2  ;;  %v927_v10 = vpop.eup %926  ;;  %v316_v32 = vmul.f32 0.6931472, %v925_v61  ;;  %v1777_v50 = vld [vmem:[#allocation34_spill] sm:$0xff] }
 0x1fd   :  { %v348_v28 = vmul.f32 0.6931472, %v927_v10  ;;  %v929_v54 = vpop.eup %928  ;;  %vm711_vm6 = vcmp.ne.s32.totalorder %v1777_v50, 3 }
 0x1fe   :  { %v931_v21 = vpop.eup %930  ;;  %v320_v11 = vmul.f32 0.6931472, %v929_v54  ;;  %v1785_v54 = vld [vmem:[#allocation23_spill] sm:$0xff] }
 0x1ff   :  { %v458_v59 = vpop.permute.xlu2 %457  ;;  %v377_v8 = vadd.f32 %v348_v28, %v1770_v63  ;;  %v354_v58 = vmul.f32 0.6931472, %v931_v21  ;;  %v933_v1 = vpop.eup %932  ;;  %v1783_v28 = vld [vmem:[#allocation11_spill] sm:$0xff]  ;;  %vm699_vm9 = vcmp.ne.s32.totalorder %v1785_v54, 3  ;;  %v1802_v54 = vld [vmem:[#allocation17_spill] sm:$0xff] }
 0x200   :  { %vm483_vm0 = vcmp.eq.s32.totalorder %v1395_v38, %v458_v59  ;;  %v314_v38 = vmul.f32 0.6931472, %v921_v19  ;;  %v363_v9 = vadd.f32 %v320_v11, %v1773_v26  ;;  %v1790_v26 = vld [vmem:[#allocation10_spill] sm:$0xff] }
 0x201   :  { %v508_v20 = vsel %vm483_vm0, 0.9, %v1764_v42  ;;  %v380_v13 = vadd.f32 %v354_v58, %v1775_v12 }
 0x202   :  { %v533_v60 = vmul.f32 %v508_v20, %v1150_v24  ;;  %v360_v42 = vadd.f32 %v314_v38, %v1165_v33  ;;  %v365_v24 = vadd.f32 %v324_v51, %v1177_v44  ;;  %v361_v44 = vadd.f32 %v316_v32, %v1768_v37 }
 0x204   :  { %576 = vadd.xlane.f32.xlu1 %v530_v52  ;;  %572 = vadd.xlane.f32.xlu0 %v528_v29  ;;  %v326_v52 = vmul.f32 0.6931472, %v933_v1 }
 0x206   :  { %v366_v38 = vadd.f32 %v326_v52, %v1779_v23 }
 0x20c   :  { %582 = vadd.xlane.f32.xlu1 %v533_v60  ;;  %578 = vadd.xlane.f32.xlu0 %v531_v36  ;;  %v777_v60 = vsel %vm763_vm8, %v1528_v27, 0.0  ;;  %v935_v36 = vpop.eup %934 }
 0x20d   :  { %v937_v51 = vpop.eup %936 }
 0x20e   :  { %v332_v18 = vmul.f32 0.6931472, %v937_v51 }
 0x237   :  { %v541_v22 = vpop.xlane.xlu0 %540 }
 0x238   :  { %v587_v40 = vsub.f32 %v360_v42, %v541_v22  ;;  %v551_v57 = vpop.xlane.xlu2 %550  ;;  %v1780_v42 = vld [vmem:[#allocation49_spill] sm:$0xff] }
 0x239   :  { %v592_v48 = vsub.f32 %v365_v24, %v551_v57  ;;  %vm697_vm7 = vcmp.ne.s32.totalorder %v1780_v42, 3  ;;  %v1781_v24 = vld [vmem:[#allocation35_spill] sm:$0xff]  ;;  %v330_v57 = vmul.f32 0.6931472, %v935_v36 }
 0x23a   :  { %v741_v62 = vsel %vm691_vm1, %v587_v40, 0.0  ;;  %938 = vlog2.f32 %v1781_v24  ;;  %v1782_v40 = vld [vmem:[#allocation37_spill] sm:$0xff]  ;;  %v1798_v24 = vld [vmem:[#allocation51_spill] sm:$0xff] }
 0x23b   :  { %v769_v33 = vsel %vm763_vm8, %v741_v62, 0.0  ;;  %v746_v34 = vsel %vm696_vm2, %v592_v48, 0.0  ;;  %940 = vlog2.f32 %v1782_v40  ;;  %vm703_vm14 = vcmp.ne.s32.totalorder %v1798_v24, 3  ;;  %v1799_v40 = vld [vmem:[#allocation41_spill] sm:$0xff]  ;;  %v1813_v24 = vld [vmem:[#allocation32_spill] sm:$0xff] }
 0x23c   :  { %v770_v5 = vadd.f32 %v769_v33, %v1511_v47  ;;  %v779_v61 = vsel %vm763_vm8, %v746_v34, 0.0  ;;  %v369_v33 = vadd.f32 %v332_v18, %v1783_v28  ;;  %v1784_v34 = vld [vmem:[#allocation7_spill] sm:$0xff] }
 0x23f   :  { %v543_v7 = vpop.xlane.xlu0 %542 }
 0x240   :  { %v588_v46 = vsub.f32 %v361_v44, %v543_v7  ;;  %v575_v39 = vpop.xlane.xlu2 %574  ;;  %v939_v62 = vpop.eup %938 }
 0x241   :  { %v604_v55 = vsub.f32 %v377_v8, %v575_v39  ;;  %v941_v44 = vpop.eup %940  ;;  %v1787_v8 = vld [vmem:[#allocation40_spill] sm:$0xff]  ;;  %v336_v43 = vmul.f32 0.6931472, %v939_v62 }
 0x242   :  { %v742_v53 = vsel %vm692_vm3, %v588_v46, 0.0  ;;  %942 = vlog2.f32 %v1787_v8  ;;  %v1788_v46 = vld [vmem:[#allocation39_spill] sm:$0xff]  ;;  %v334_v39 = vmul.f32 0.6931472, %v941_v44  ;;  %v1803_v8 = vld [vmem:[#allocation25_spill] sm:$0xff] }
 0x243   :  { %v771_v47 = vsel %vm763_vm8, %v742_v53, 0.0  ;;  %v1598_v49 = vsel %vm708_vm4, %v604_v55, 0.0  ;;  %944 = vlog2.f32 %v1788_v46  ;;  %vm705_vm0 = vcmp.ne.s32.totalorder %v1803_v8, 3 }
 0x244   :  { %v772_v4 = vadd.f32 %v771_v47, %v770_v5  ;;  %v368_v5 = vadd.f32 %v330_v57, %v1784_v34  ;;  %946 = vlog2.f32 %v1793_v30  ;;  %vm710_vm4 = vcmp.ne.s32.totalorder %v1813_v24, 3 }
 0x246   :  { %v774_v14 = vadd.f32 %v773_v6, %v772_v4  ;;  %v1789_v4 = vld [vmem:[#allocation9_spill] sm:$0xff] }
 0x247   :  { %v547_v31 = vpop.xlane.xlu0 %546  ;;  %v371_v6 = vadd.f32 %v336_v43, %v1789_v4  ;;  %v986_v43 = vmov 0.0  }
 0x248   :  { %v590_v2 = vsub.f32 %v363_v9, %v547_v31  ;;  %v581_v16 = vpop.xlane.xlu2 %580  ;;  %v943_v47 = vpop.eup %942  ;;  %v370_v9 = vadd.f32 %v334_v39, %v1790_v26  ;;  %v1792_v31 = vld [vmem:[#allocation27_spill] sm:$0xff]  ;;  %81 = vst.msk [vmem:[#allocation2] sm:$0x1] %vm80_vm15, %v986_v43 }
 0x249   :  { %v607_v59 = vsub.f32 %v380_v13, %v581_v16  ;;  %v945_v1 = vpop.eup %944  ;;  %vm701_vm12 = vcmp.ne.s32.totalorder %v1792_v31, 3  ;;  %v1794_v16 = vld [vmem:[#allocation42_spill] sm:$0xff]  ;;  %v338_v17 = vmul.f32 0.6931472, %v943_v47  ;;  %v1805_v39 = vld [vmem:[#allocation43_spill] sm:$0xff]  ;;  %v1808_v31 = vld [vmem:[#allocation16_spill] sm:$0xff] }
 0x24a   :  { %v744_v0 = vsel %vm694_vm5, %v590_v2, 0.0  ;;  %948 = vlog2.f32 %v1794_v16  ;;  %v947_v36 = vpop.eup %946 }
 0x24b   :  { %v775_v29 = vsel %vm763_vm8, %v744_v0, 0.0  ;;  %v1609_v15 = vsel %vm711_vm6, %v607_v59, 0.0  ;;  %v340_v59 = vmul.f32 0.6931472, %v945_v1  ;;  %950 = vlog2.f32 %v1799_v40  ;;  %v1807_v1 = vld [vmem:[#allocation19_spill] sm:$0xff] }
 0x24c   :  { %v776_v20 = vadd.f32 %v775_v29, %v774_v14 }
 0x24e   :  { %v778_v19 = vadd.f32 %v777_v60, %v776_v20 }
 0x24f   :  { %v553_v22 = vpop.xlane.xlu0 %552 }
 0x250   :  { %v780_v10 = vadd.f32 %v779_v61, %v778_v19  ;;  %v593_v35 = vsub.f32 %v366_v38, %v553_v22  ;;  %v1795_v19 = vld [vmem:[#allocation13_spill] sm:$0xff]  ;;  %v1796_v38 = vld [vmem:[#allocation14_spill] sm:$0xff]  ;;  %v949_v61 = vpop.eup %948  ;;  %v1797_v22 = vld [vmem:[#allocation28_spill] sm:$0xff] }
 0x251   :  { %v373_v23 = vadd.f32 %v340_v59, %v1795_v19  ;;  %v372_v51 = vadd.f32 %v338_v17, %v1796_v38  ;;  %vm704_vm13 = vcmp.ne.s32.totalorder %v1797_v22, 3  ;;  %v951_v44 = vpop.eup %950 }
 0x252   :  { %v747_v48 = vsel %vm697_vm7, %v593_v35, 0.0 }
 0x253   :  { %v781_v27 = vsel %vm763_vm8, %v747_v48, 0.0  ;;  %v342_v48 = vmul.f32 0.6931472, %v947_v36 }
 0x254   :  { %v782_v32 = vadd.f32 %v781_v27, %v780_v10  ;;  %v1800_v27 = vld [vmem:[#allocation45_spill] sm:$0xff] }
 0x255   :  { %952 = vlog2.f32 %v1800_v27 }
 0x256   :  { %v784_v37 = vadd.f32 %v783_v41, %v782_v32  ;;  %v344_v32 = vmul.f32 0.6931472, %v949_v61  ;;  %954 = vlog2.f32 %v1805_v39  ;;  %v1812_v61 = vld [vmem:[#allocation20_spill] sm:$0xff] }
 0x257   :  { %v559_v7 = vpop.xlane.xlu1 %558  ;;  %v557_v63 = vpop.xlane.xlu0 %556 }
 0x258   :  { %v596_v21 = vsub.f32 %v369_v33, %v559_v7  ;;  %v595_v45 = vsub.f32 %v368_v5, %v557_v63  ;;  %v1801_v5 = vld [vmem:[#allocation12_spill] sm:$0xff]  ;;  %v375_v25 = vadd.f32 %v344_v32, %v1802_v54 }
 0x25a   :  { %v750_v3 = vsel %vm700_vm10, %v596_v21, 0.0  ;;  %v749_v55 = vsel %vm699_vm9, %v595_v45, 0.0  ;;  %v1804_v21 = vld [vmem:[#allocation52_spill] sm:$0xff] }
 0x25b   :  { %v785_v11 = vsel %vm763_vm8, %v749_v55, 0.0  ;;  %v787_v58 = vsel %vm763_vm8, %v750_v3, 0.0  ;;  %v953_v63 = vpop.eup %952  ;;  %vm706_vm1 = vcmp.ne.s32.totalorder %v1804_v21, 3 }
 0x25c   :  { %v786_v53 = vadd.f32 %v785_v11, %v784_v37  ;;  %v374_v37 = vadd.f32 %v342_v48, %v1801_v5  ;;  %v1806_v11 = vld [vmem:[#allocation46_spill] sm:$0xff] }
 0x25d   :  { %956 = vlog2.f32 %v1806_v11 }
 0x25e   :  { %v788_v14 = vadd.f32 %v787_v58, %v786_v53  ;;  %v346_v53 = vmul.f32 0.6931472, %v951_v44  ;;  %v350_v58 = vmul.f32 0.6931472, %v953_v63  ;;  %v819_v63 = vld [vmem:[#allocation2] sm:$0x1] }
 0x25f   :  { %v563_v12 = vpop.xlane.xlu1 %562  ;;  %v561_v13 = vpop.xlane.xlu0 %560 }
 0x260   :  { %v598_v50 = vsub.f32 %v371_v6, %v563_v12  ;;  %v597_v2 = vsub.f32 %v370_v9, %v561_v13  ;;  %v378_v56 = vadd.f32 %v350_v58, %v1807_v1  ;;  %v376_v12 = vadd.f32 %v346_v53, %v1808_v31 }
 0x262   :  { %v752_v52 = vsel %vm702_vm11, %v598_v50, 0.0  ;;  %v751_v0 = vsel %vm701_vm12, %v597_v2, 0.0  ;;  %v1809_v50 = vld [vmem:[#allocation29_spill] sm:$0xff] }
 0x263   :  { %v789_v29 = vsel %vm763_vm8, %v751_v0, 0.0  ;;  %v791_v60 = vsel %vm763_vm8, %v752_v52, 0.0  ;;  %vm707_vm2 = vcmp.ne.s32.totalorder %v1809_v50, 3  ;;  %v1810_v2 = vld [vmem:[#allocation53_spill] sm:$0xff] }
 0x264   :  { %v790_v20 = vadd.f32 %v789_v29, %v788_v14  ;;  %v955_v14 = vpop.eup %954  ;;  %vm709_vm3 = vcmp.ne.s32.totalorder %v1810_v2, 3 }
 0x265   :  { %v957_v30 = vpop.eup %956  ;;  %v352_v0 = vmul.f32 0.6931472, %v955_v14 }
 0x266   :  { %v792_v42 = vadd.f32 %v791_v60, %v790_v20  ;;  %v356_v29 = vmul.f32 0.6931472, %v957_v30 }
 0x267   :  { %v567_v10 = vpop.xlane.xlu1 %566  ;;  %v565_v35 = vpop.xlane.xlu0 %564  ;;  %v379_v22 = vadd.f32 %v352_v0, %v1812_v61 }
 0x268   :  { %v600_v57 = vsub.f32 %v373_v23, %v567_v10  ;;  %v599_v18 = vsub.f32 %v372_v51, %v565_v35  ;;  %v803_v23 = vsel %vm763_vm8, %v1598_v49, 0.0  ;;  %v1811_v51 = vld [vmem:[#allocation21_spill] sm:$0xff]  ;;  %v1814_v10 = vld [vmem:[#allocation54_spill] sm:$0xff] }
 0x269   :  { %vm712_vm5 = vcmp.ne.s32.totalorder %v1814_v10, 3 }
 0x26a   :  { %v754_v41 = vsel %vm704_vm13, %v600_v57, 0.0  ;;  %v753_v62 = vsel %vm703_vm14, %v599_v18, 0.0 }
 0x26b   :  { %v793_v28 = vsel %vm763_vm8, %v753_v62, 0.0  ;;  %v795_v34 = vsel %vm763_vm8, %v754_v41, 0.0 }
 0x26c   :  { %v794_v33 = vadd.f32 %v793_v28, %v792_v42  ;;  %v381_v42 = vadd.f32 %v356_v29, %v1811_v51  ;;  %v809_v28 = vsel %vm763_vm8, %v1609_v15, 0.0 }
 0x26e   :  { %v796_v7 = vadd.f32 %v795_v34, %v794_v33 }
 0x26f   :  { %v571_v45 = vpop.xlane.xlu1 %570  ;;  %v569_v46 = vpop.xlane.xlu0 %568 }
 0x270   :  { %v602_v3 = vsub.f32 %v375_v25, %v571_v45  ;;  %v601_v55 = vsub.f32 %v374_v37, %v569_v46 }
 0x272   :  { %v756_v47 = vsel %vm706_vm1, %v602_v3, 0.0  ;;  %v755_v4 = vsel %vm705_vm0, %v601_v55, 0.0 }
 0x273   :  { %v797_v6 = vsel %vm763_vm8, %v755_v4, 0.0  ;;  %v799_v9 = vsel %vm763_vm8, %v756_v47, 0.0 }
 0x274   :  { %v798_v26 = vadd.f32 %v797_v6, %v796_v7 }
 0x276   :  { %v800_v13 = vadd.f32 %v799_v9, %v798_v26 }
 0x277   :  { %v577_v16 = vpop.xlane.xlu1 %576  ;;  %v573_v17 = vpop.xlane.xlu0 %572 }
 0x278   :  { %v605_v59 = vsub.f32 %v378_v56, %v577_v16  ;;  %v603_v52 = vsub.f32 %v376_v12, %v573_v17 }
 0x27a   :  { %v759_v20 = vsel %vm709_vm3, %v605_v59, 0.0  ;;  %v757_v60 = vsel %vm707_vm2, %v603_v52, 0.0 }
 0x27b   :  { %v801_v36 = vsel %vm763_vm8, %v757_v60, 0.0  ;;  %v805_v35 = vsel %vm763_vm8, %v759_v20, 0.0 }
 0x27c   :  { %v802_v19 = vadd.f32 %v801_v36, %v800_v13 }
 0x27e   :  { %v804_v38 = vadd.f32 %v803_v23, %v802_v19 }
 0x27f   :  { %v583_v40 = vpop.xlane.xlu1 %582  ;;  %v579_v57 = vpop.xlane.xlu0 %578 }
 0x280   :  { %v608_v18 = vsub.f32 %v381_v42, %v583_v40  ;;  %v806_v48 = vadd.f32 %v805_v35, %v804_v38  ;;  %v606_v27 = vsub.f32 %v379_v22, %v579_v57 }
 0x282   :  { %v762_v32 = vsel %vm712_vm5, %v608_v18, 0.0  ;;  %v760_v41 = vsel %vm710_vm4, %v606_v27, 0.0 }
 0x283   :  { %v807_v49 = vsel %vm763_vm8, %v760_v41, 0.0  ;;  %v811_v34 = vsel %vm763_vm8, %v762_v32, 0.0 }
 0x284   :  { %v808_v62 = vadd.f32 %v807_v49, %v806_v48 }
 0x286   :  { %v810_v33 = vadd.f32 %v809_v28, %v808_v62 }
 0x288   :  { %v812_v5 = vadd.f32 %v811_v34, %v810_v33 }
 0x28a   :  { %v813_v37 = vrot.slane %v812_v5, 4 }
 0x28c   :  { %v814_v44 = vadd.f32 %v813_v37, %v812_v5 }
 0x28e   :  { %v815_v54 = vrot.slane %v814_v44, 2 }
 0x290   :  { %v816_v25 = vadd.f32 %v815_v54, %v814_v44 }
 0x292   :  { %v817_v7 = vrot.slane %v816_v25, 1 }
 0x294   :  { %v818_v8 = vadd.f32 %v817_v7, %v816_v25 }
 0x296   :  { %v820_v21 = vadd.f32 %v819_v63, %v818_v8 }
 0x298   :  { %822 = vst.msk [vmem:[#allocation2] sm:$0x1] %vm80_vm15, %v820_v21 }
 0x299   :  { %833 = dma.vmem_to_hbm [thread:$0]  %s829_s23, 16, %s831_s26, [#allocation3]  }
 0x29a   :  { %982 = dma.done.wait [#allocation3], 16  }
 0x29b   :  { %983 = vsyncadd [#allocation3], 4294967280 }
 0x29c   :  { %838 = vsyncpa [#allocation3], 1 }

</bundles_post_ra>
